<compile_context>
chip_gen: v7x
topology: tpu7x:2x2x1
jax: 0.10.0
libtpu: 0.0.40
codegen_flags: <defaults>
</compile_context>

<pallas_src>
import jax
import jax.numpy as jnp
from jax.experimental import pallas as pl
from jax.experimental.pallas import tpu as pltpu


def _encoder_baseline_kernel(bias_ref, ctx_ref, w_ref, o_ref):
    # bias_ref: (1, 1) SMEM f32 scalar = projection(param) + b_proj + b_enc (grid-invariant)
    # ctx_ref : (TB, D) VMEM tile of context embeddings (input dtype)
    # w_ref   : (D, 1)  VMEM resident encoder weight column (input dtype)
    # o_ref   : (TB, 1) output tile
    encoded = jnp.dot(ctx_ref[...], w_ref[...],
                      preferred_element_type=jnp.float32)        # (TB, 1) f32, MXU
    o_ref[...] = (encoded + bias_ref[0, 0]).astype(o_ref.dtype)


def _round_up(x, m):
    return ((x + m - 1) // m) * m


def parametric_conditional_baseline(ctx, w_enc, b_enc, param, w_proj, b_proj,
                                    *, target_tile_bytes=4 << 20,
                                    vmem_budget_bytes=24 << 20):
    """ctx: (B, D); w_enc: (D, 1); b_enc: (1, 1); param: (1, P); w_proj: (P, 1); b_proj: (1, 1)."""
    B, D = ctx.shape
    ctx_dtype = ctx.dtype
    out_dtype = ctx_dtype                     # match PyTorch: Identity keeps the input dtype
    itemsize = jnp.dtype(ctx_dtype).itemsize

    # Hoist the grid-invariant parametric baseline out of the kernel, fold in b_enc (f32).
    scalar = (
        jnp.sum(param.astype(jnp.float32) * w_proj.astype(jnp.float32).reshape(1, -1),
                axis=-1, keepdims=True)
        + b_proj.astype(jnp.float32)
        + b_enc.astype(jnp.float32)
    )  # (1, 1) f32

    # Encoder weight as a (D, 1) column for the MXU dot; stream ctx in its own dtype.
    w_col = w_enc.reshape(D, 1).astype(ctx_dtype)

    # ---- batch-tile selection ----------------------------------------------------
    row_bytes = D * itemsize
    tb = max(8, (target_tile_bytes // row_bytes) // 8 * 8)

    # VMEM estimate: 2 x ctx tile (double-buffered) + 2 x (tb, 1) output block
    # (minor dim lane-pads to 128; assume f32 tiles as the worst case) + weight tile.
    def _vmem_need(t):
        return 2 * t * row_bytes + 2 * t * 128 * 4 + 2 * 8 * 128 * 4

    while _vmem_need(tb) > vmem_budget_bytes and tb > 8:
        tb = max(8, (tb // 2) // 8 * 8)

    tb = min(tb, _round_up(B, 8))
    if B <= tb and B >= 16:
        # Split into >=2 tiles so the "parallel" batch axis can shard across both
        # v7x TensorCores (one extra ~0.35us grid step; negligible on single-TC chips).
        tb = _round_up((B + 1) // 2, 8)

    grid_b = -(-B // tb)  # cdiv; last block may be ragged (masked writeback)

    out = pl.pallas_call(
        _encoder_baseline_kernel,
        out_shape=jax.ShapeDtypeStruct((B, 1), out_dtype),
        grid=(grid_b,),
        in_specs=[
            pl.BlockSpec(memory_space=pltpu.MemorySpace.SMEM),   # folded scalar bias
            pl.BlockSpec((tb, D), lambda i: (i, 0)),             # ctx batch tile (streamed)
            pl.BlockSpec((D, 1), lambda i: (0, 0)),              # resident weight column
        ],
        out_specs=pl.BlockSpec((tb, 1), lambda i: (i, 0)),
        compiler_params=pltpu.CompilerParams(
            dimension_semantics=("parallel",),
            vmem_limit_bytes=48 * 1024 * 1024),
        cost_estimate=pl.CostEstimate(
            flops=2 * B * D,
            transcendentals=0,
            bytes_accessed=B * D * itemsize
                           + B * jnp.dtype(out_dtype).itemsize
                           + D * itemsize),
    )(scalar, ctx, w_col)

    return out


def _reference(ctx, w_enc, b_enc, param, w_proj, b_proj):
    D = ctx.shape[1]
    P = param.shape[1]
    encoded = (jnp.sum(ctx.astype(jnp.float32) * w_enc.reshape(1, D).astype(jnp.float32),
                       axis=-1, keepdims=True)
               + b_enc.astype(jnp.float32)[0, 0])
    scalar = (jnp.sum(param.astype(jnp.float32) * w_proj.reshape(1, P).astype(jnp.float32))
              + b_proj.astype(jnp.float32)[0, 0])
    return (encoded + scalar).astype(ctx.dtype)


if __name__ == "__main__":
    # Small shapes consistent with the module's forward.
    D = 128        # embed_dim (encoder input width)
    P = 128        # param_dim

    key = jax.random.PRNGKey(0)
    k_ctx, k_ctx2, k_param, k_we, k_wp = jax.random.split(key, 5)

    # ParametricBaseline: param ~ randn(1, param_dim); projection = Linear(param_dim, 1), bias = 0.0
    param = jax.random.normal(k_param, (1, P), dtype=jnp.float32)
    w_proj = jax.random.normal(k_wp, (P, 1), dtype=jnp.float32) * (1.0 / jnp.sqrt(P))
    b_proj = jnp.zeros((1, 1), dtype=jnp.float32)

    # Encoder: Linear(embed_dim, 1) with deterministic init.
    w_enc = jax.random.normal(k_we, (D, 1), dtype=jnp.float32) * (1.0 / jnp.sqrt(D))
    b_enc = jnp.zeros((1, 1), dtype=jnp.float32)

    # Test 1: small aligned batch (single tile).
    B1 = 8
    ctx1 = jax.random.normal(k_ctx, (B1, D), dtype=jnp.float32)
    out1 = jax.block_until_ready(
        parametric_conditional_baseline(ctx1, w_enc, b_enc, param, w_proj, b_proj))
    ref1 = _reference(ctx1, w_enc, b_enc, param, w_proj, b_proj)
    assert out1.shape == (B1, 1)
    assert jnp.allclose(out1, ref1, atol=1e-5, rtol=1e-5)

    # Test 2: non-multiple-of-8 batch -> exercises multi-tile grid + ragged last block
    # (masked writeback, no jnp.pad HBM copy).
    B2 = 20
    ctx2 = jax.random.normal(k_ctx2, (B2, D), dtype=jnp.float32)
    out2 = jax.block_until_ready(
        parametric_conditional_baseline(ctx2, w_enc, b_enc, param, w_proj, b_proj))
    ref2 = _reference(ctx2, w_enc, b_enc, param, w_proj, b_proj)
    assert out2.shape == (B2, 1)
    assert jnp.allclose(out2, ref2, atol=1e-5, rtol=1e-5)

    print("KERNEL_OK")
</pallas_src>

<mosaic_0001>
module attributes {stable_mosaic.version = 11 : i64} {
  func.func @_encoder_baseline_kernel(%arg0: i32, %arg1: memref<1x1xf32, #tpu.memory_space<smem>>, %arg2: memref<8x128xf32, #tpu.memory_space<vmem>>, %arg3: memref<128x1xf32, #tpu.memory_space<vmem>>, %arg4: memref<8x1xf32, #tpu.memory_space<vmem>>) attributes {dimension_semantics = [#tpu.dimension_semantics<parallel>], iteration_bounds = array<i64: 1>, scalar_prefetch = 0 : i64, scratch_operands = 0 : i64, tpu.core_type = #tpu.core_type<tc>, window_params = [{transform_indices = @transform_0, window_bounds = array<i64: 1, 1>}, {transform_indices = @transform_1, window_bounds = array<i64: 8, 128>}, {pipeline_mode = #tpu.pipeline_mode<synchronous>, transform_indices = @transform_2, window_bounds = array<i64: 128, 1>}, {transform_indices = @transform_3, window_bounds = array<i64: 8, 1>}]} {
    %c0 = arith.constant 0 : index
    %c0_0 = arith.constant 0 : index
    %0 = vector.load %arg2[%c0, %c0_0] : memref<8x128xf32, #tpu.memory_space<vmem>>, vector<8x128xf32>
    %c0_1 = arith.constant 0 : index
    %c0_2 = arith.constant 0 : index
    %1 = vector.load %arg3[%c0_1, %c0_2] : memref<128x1xf32, #tpu.memory_space<vmem>>, vector<128x1xf32>
    %cst = arith.constant dense<0.000000e+00> : vector<8x1xf32>
    %2 = tpu.matmul %0, %1, %cst {dimension_numbers = #tpu.dot_dimension_numbers<[1], [0], [0], [1], [0, 0, 1, 1], [], []>} : vector<8x128xf32>, vector<128x1xf32>, vector<8x1xf32> -> vector<8x1xf32>
    %c0_3 = arith.constant 0 : index
    %c0_4 = arith.constant 0 : index
    %3 = memref.load %arg1[%c0_3, %c0_4] : memref<1x1xf32, #tpu.memory_space<smem>>
    %4 = vector.broadcast %3 : f32 to vector<8x1xf32>
    %5 = arith.addf %2, %4 : vector<8x1xf32>
    %c0_5 = arith.constant 0 : index
    %c0_6 = arith.constant 0 : index
    %6 = vector.load %arg4[%c0_5, %c0_6] : memref<8x1xf32, #tpu.memory_space<vmem>>, vector<8x1xf32>
    tpu.vector_store %arg4[%c0_5, %c0_6], %5 {strides = array<i32>} : memref<8x1xf32, #tpu.memory_space<vmem>>, vector<8x1xf32>,
    return
  }
  func.func @transform_0(%arg0: i32) -> (i32, i32) {
    %c0_i32 = arith.constant 0 : i32
    %c0_i32_0 = arith.constant 0 : i32
    %c0_i32_1 = arith.constant 0 : i32
    return %c0_i32, %c0_i32_0 : i32, i32
  }
  func.func @transform_1(%arg0: i32) -> (i32, i32) {
    %c0_i32 = arith.constant 0 : i32
    %c0_i32_0 = arith.constant 0 : i32
    return %arg0, %c0_i32 : i32, i32
  }
  func.func @transform_2(%arg0: i32) -> (i32, i32) {
    %c0_i32 = arith.constant 0 : i32
    %c0_i32_0 = arith.constant 0 : i32
    %c0_i32_1 = arith.constant 0 : i32
    return %c0_i32, %c0_i32_0 : i32, i32
  }
  func.func @transform_3(%arg0: i32) -> (i32, i32) {
    %c0_i32 = arith.constant 0 : i32
    %c0_i32_0 = arith.constant 0 : i32
    return %arg0, %c0_i32 : i32, i32
  }
}

</mosaic_0001>

<bundles_post_ra>
// kernel: tpu_custom_call.1
= control target key start
LH: loop header
LB: loop body
LE: loop exit
PB: predicated region body
PF: predicated region fallthrough
CT: control target
= control target key end

     0   :  { %v189_v0 = vmov 0.0|0.0   ;;  %vm190_vm0 = vmmov 0   ;;  %v191_v4 = vmov 0.0   ;;  %vm104_vm1 = vcmask 7168   ;;  %s269_s2 = inlined_call_operand.vmem [shape: f32[128,1], index: 2, kind: input, shape index: {}]   ;;  %s270_s1 = inlined_call_operand.vmem [shape: f32[8,128], index: 1, kind: input, shape index: {}]   ;;  %s271_s0 = inlined_call_operand.<no memory space> [shape: f32[1,1], index: 0, kind: input, shape index: {}]   ;;  %s272_s3 = inlined_call_operand.vmem [shape: f32[8,1], index: 3, kind: output, shape index: {}]  }
   0x1   :  { %162 = vmatprep.subr.bf16.mxu0 %v189_v0  ;;  %v16_v1 = vld [vmem:[%s269_s2] sm:$0xff]  ;;  %v17_v2 = vld [vmem:[%s269_s2 + $0x8] sm:$0xff]  ;;  %v18_v3 = vld [vmem:[%s269_s2 + $0x10] sm:$0xff]  ;;  %159 = vmatprep.mubr.msk.f32.mxu0 %vm190_vm0, %v191_v4  ;;  %v33_v27 = vstv %s271_s0 }
   0x2   :  { %v163_v5 = vpack.c.bf16 %v17_v2, %v16_v1  ;;  %v19_v6 = vld [vmem:[%s269_s2 + $0x18] sm:$0xff]  ;;  %v20_v8 = vld [vmem:[%s269_s2 + $0x20] sm:$0xff]  ;;  %v21_v9 = vld [vmem:[%s269_s2 + $0x28] sm:$0xff] }
   0x3   :  { %v166_v7 = vpack.c.bf16 %v19_v6, %v18_v3  ;;  %v169_v10 = vpack.c.bf16 %v21_v9, %v20_v8  ;;  %v22_v11 = vld [vmem:[%s269_s2 + $0x30] sm:$0xff]  ;;  %v23_v12 = vld [vmem:[%s269_s2 + $0x38] sm:$0xff]  ;;  %v24_v14 = vld [vmem:[%s269_s2 + $0x40] sm:$0xff] }
   0x4   :  { %164 = vmatpush3.bf16.msra.mxu0 %v163_v5  ;;  %v172_v13 = vpack.c.bf16 %v23_v12, %v22_v11  ;;  %v25_v15 = vld [vmem:[%s269_s2 + $0x48] sm:$0xff]  ;;  %v26_v17 = vld [vmem:[%s269_s2 + $0x50] sm:$0xff]  ;;  %v27_v18 = vld [vmem:[%s269_s2 + $0x58] sm:$0xff] }
   0x5   :  { %165 = vmatprep.subr.bf16.mxu0 %v189_v0  ;;  %v175_v16 = vpack.c.bf16 %v25_v15, %v24_v14  ;;  %v178_v19 = vpack.c.bf16 %v27_v18, %v26_v17  ;;  %v28_v20 = vld [vmem:[%s269_s2 + $0x60] sm:$0xff]  ;;  %v29_v21 = vld [vmem:[%s269_s2 + $0x68] sm:$0xff]  ;;  %v30_v23 = vld [vmem:[%s269_s2 + $0x70] sm:$0xff] }
   0x6   :  { %v181_v22 = vpack.c.bf16 %v29_v21, %v28_v20  ;;  %v31_v24 = vld [vmem:[%s269_s2 + $0x78] sm:$0xff]  ;;  %v15_v26 = vld [vmem:[%s270_s1] sm:$0xff] }
   0x7   :  { %v184_v25 = vpack.c.bf16 %v31_v24, %v30_v23 }
   0x8   :  { %167 = vmatpush3.bf16.msra.mxu0 %v166_v7 }
   0x9   :  { %168 = vmatprep.subr.bf16.mxu0 %v189_v0 }
   0xc   :  { %170 = vmatpush3.bf16.msra.mxu0 %v169_v10 }
   0xd   :  { %171 = vmatprep.subr.bf16.mxu0 %v189_v0 }
  0x10   :  { %173 = vmatpush3.bf16.msra.mxu0 %v172_v13 }
  0x11   :  { %174 = vmatprep.subr.bf16.mxu0 %v189_v0 }
  0x14   :  { %176 = vmatpush3.bf16.msra.mxu0 %v175_v16 }
  0x15   :  { %177 = vmatprep.subr.bf16.mxu0 %v189_v0 }
  0x18   :  { %179 = vmatpush3.bf16.msra.mxu0 %v178_v19 }
  0x19   :  { %180 = vmatprep.subr.bf16.mxu0 %v189_v0 }
  0x1c   :  { %182 = vmatpush3.bf16.msra.mxu0 %v181_v22 }
  0x1d   :  { %183 = vmatprep.subr.bf16.mxu0 %v189_v0 }
  0x20   :  { %185 = vmatpush3.bf16.msra.mxu0 %v184_v25 }
  0x23   :  { %160 = vmatmul.mubr.f32.vlgmr.msra.gmra.mrb[0].mxu0 %v15_v26 }
  0xf6   :  { %v100_v28 = vpop.f32.mrb[0].mxu0 }
  0xf7   :  { %v101_v29 = vadd.f32 %v100_v28, %v33_v27  ;;  %v161_v30 = vpop.f32.mrb[1].mxu0 }
  0xf9   :  { %105 = vst.msk [vmem:[%s272_s3] sm:$0xff] %vm104_vm1, %v101_v29 }

</bundles_post_ra>
